<compile_context>
chip_gen: v5e
topology: v5e:2x2
jax: 0.10.0
libtpu: 0.0.40
codegen_flags: <defaults>
</compile_context>

<pallas_src>
import jax
import jax.numpy as jnp
from jax.experimental import pallas as pl
from jax.experimental.pallas import tpu as pltpu

FEATURES = 256
TILE_B = 512  # rows per grid step: 512*256*4B = 512 KiB/tile, ~1 MiB double-buffered
              # -> comfortably within scoped VMEM on v5e/v6e/v7x.


def _round_up(x: int, m: int) -> int:
    return ((x + m - 1) // m) * m


def _discriminator_kernel(x_ref, w_ref, b_ref, out_ref):
    # x_ref: (TB, 256) VMEM   w_ref: (1, 256) VMEM (resident)   b_ref: (1,1) SMEM
    x = x_ref[...]                                   # (TB, 256)
    w = w_ref[...]                                   # (1, 256) -> broadcast over rows
    # VPU multiply + cross-lane reduce (avoids a 1-column MXU matmul).
    y = jnp.sum(x * w, axis=-1, keepdims=True)       # (TB, 1)
    out_ref[...] = y + b_ref[0, 0]
    # NOTE: output writeback is (TB,1) -> <0.5% of the x read traffic and the
    # masked stores are fully hidden under the HBM-bound x DMA, so we keep the
    # natural column layout instead of an in-kernel sublane->lane relayout.


def discriminator_forward(vp, params, *, tile_b: int = TILE_B):
    """vp: (B, 256) float32. params: dict with w1,b1,w2,b2,w3,b3 (weights stored (in,out))."""
    B, F = vp.shape
    assert F == FEATURES, f"expected {FEATURES} input features, got {F}"

    w1, b1 = params["w1"], params["b1"]   # (256,128), (1,128)
    w2, b2 = params["w2"], params["b2"]   # (128,128), (1,128)
    w3, b3 = params["w3"], params["b3"]   # (128,1),   (1,1)

    # Exact algebraic collapse (trace-time, tiny XLA ops outside the kernel).
    w_eff = w1 @ w2 @ w3                          # (256, 1)
    b_eff = b1 @ w2 @ w3 + b2 @ w3 + b3           # (1, 1)
    w_row = jnp.transpose(w_eff)                  # (1, 256) broadcast row for the VPU

    # Batch tiling (pad B up to a multiple of the tile).
    tb = tile_b if B >= tile_b else _round_up(B, 8)
    b_pad = _round_up(B, tb)
    x = vp if b_pad == B else jnp.pad(vp, ((0, b_pad - B), (0, 0)))
    grid = (b_pad // tb,)

    cost = pl.CostEstimate(
        flops=2 * b_pad * F,
        transcendentals=0,
        bytes_accessed=b_pad * F * 4 + b_pad * 4 + F * 4 + 4,
    )

    out = pl.pallas_call(
        _discriminator_kernel,
        out_shape=jax.ShapeDtypeStruct((b_pad, 1), jnp.float32),
        grid=grid,
        in_specs=[
            pl.BlockSpec((tb, F), lambda i: (i, 0)),           # x: batch-tiled
            pl.BlockSpec((1, F), lambda i: (0, 0)),            # w_row: VMEM-resident
            pl.BlockSpec(memory_space=pltpu.MemorySpace.SMEM), # b_eff: scalar in SMEM
        ],
        out_specs=pl.BlockSpec((tb, 1), lambda i: (i, 0)),
        compiler_params=pltpu.CompilerParams(
            dimension_semantics=("parallel",),
        ),
        cost_estimate=cost,
    )(x, w_row, b_eff)

    return out[:B]


def init_params(key):
    """PyTorch nn.Linear default init: U(-1/sqrt(fan_in), 1/sqrt(fan_in))."""
    def linear(k, fan_in, fan_out):
        kw, kb = jax.random.split(k)
        bound = 1.0 / jnp.sqrt(fan_in)
        w = jax.random.uniform(kw, (fan_in, fan_out), jnp.float32, -bound, bound)
        b = jax.random.uniform(kb, (1, fan_out), jnp.float32, -bound, bound)
        return w, b

    k1, k2, k3 = jax.random.split(key, 3)
    w1, b1 = linear(k1, 256, 128)
    w2, b2 = linear(k2, 128, 128)
    w3, b3 = linear(k3, 128, 1)
    return dict(w1=w1, b1=b1, w2=w2, b2=b2, w3=w3, b3=b3)


def reference_forward(vp, params):
    """Plain-JAX reference matching the PyTorch module (3 sequential Linears)."""
    h = vp @ params["w1"] + params["b1"]
    h = h @ params["w2"] + params["b2"]
    return h @ params["w3"] + params["b3"]


if __name__ == "__main__":
    key = jax.random.PRNGKey(0)
    kp, kx1, kx2 = jax.random.split(key, 3)
    params = init_params(kp)

    # Small example consistent with nn.Linear(256, 128): batch=8, features=256.
    vp = jax.random.normal(kx1, (8, 256), jnp.float32)
    out = jax.block_until_ready(discriminator_forward(vp, params))
    ref = reference_forward(vp, params)
    assert out.shape == (8, 1), out.shape
    assert jnp.allclose(out, ref, atol=1e-4, rtol=1e-4), (
        f"max abs err {float(jnp.max(jnp.abs(out - ref)))}")

    # Larger, non-multiple-of-tile batch to exercise the tiled + padded grid path.
    vp2 = jax.random.normal(kx2, (600, 256), jnp.float32)
    out2 = jax.block_until_ready(discriminator_forward(vp2, params))
    ref2 = reference_forward(vp2, params)
    assert out2.shape == (600, 1), out2.shape
    assert jnp.allclose(out2, ref2, atol=1e-4, rtol=1e-4), (
        f"max abs err {float(jnp.max(jnp.abs(out2 - ref2)))}")

    print("KERNEL_OK")
</pallas_src>

<mosaic_0001>
module attributes {stable_mosaic.version = 11 : i64} {
  func.func @_discriminator_kernel(%arg0: i32, %arg1: memref<8x256xf32, #tpu.memory_space<vmem>>, %arg2: memref<1x256xf32, #tpu.memory_space<vmem>>, %arg3: memref<1x1xf32, #tpu.memory_space<smem>>, %arg4: memref<8x1xf32, #tpu.memory_space<vmem>>) attributes {dimension_semantics = [#tpu.dimension_semantics<parallel>], iteration_bounds = array<i64: 1>, scalar_prefetch = 0 : i64, scratch_operands = 0 : i64, tpu.core_type = #tpu.core_type<tc>, window_params = [{transform_indices = @transform_0, window_bounds = array<i64: 8, 256>}, {pipeline_mode = #tpu.pipeline_mode<synchronous>, transform_indices = @transform_1, window_bounds = array<i64: 1, 256>}, {transform_indices = @transform_2, window_bounds = array<i64: 1, 1>}, {transform_indices = @transform_3, window_bounds = array<i64: 8, 1>}]} {
    %c0 = arith.constant 0 : index
    %c0_0 = arith.constant 0 : index
    %0 = vector.load %arg1[%c0, %c0_0] : memref<8x256xf32, #tpu.memory_space<vmem>>, vector<8x256xf32>
    %c0_1 = arith.constant 0 : index
    %c0_2 = arith.constant 0 : index
    %1 = vector.load %arg2[%c0_1, %c0_2] : memref<1x256xf32, #tpu.memory_space<vmem>>, vector<1x256xf32>
    %2 = vector.broadcast %1 : vector<1x256xf32> to vector<8x256xf32>
    %3 = arith.mulf %0, %2 : vector<8x256xf32>
    %cst = arith.constant dense<0.000000e+00> : vector<8xf32>
    %4 = vector.multi_reduction <add>, %3, %cst [1] : vector<8x256xf32> to vector<8xf32>
    %5 = vector.shape_cast %4 : vector<8xf32> to vector<8x1xf32>
    %c0_3 = arith.constant 0 : index
    %c0_4 = arith.constant 0 : index
    %6 = memref.load %arg3[%c0_3, %c0_4] : memref<1x1xf32, #tpu.memory_space<smem>>
    %7 = vector.broadcast %6 : f32 to vector<8x1xf32>
    %8 = arith.addf %5, %7 : vector<8x1xf32>
    %c0_5 = arith.constant 0 : index
    %c0_6 = arith.constant 0 : index
    %9 = vector.load %arg4[%c0_5, %c0_6] : memref<8x1xf32, #tpu.memory_space<vmem>>, vector<8x1xf32>
    tpu.vector_store %arg4[%c0_5, %c0_6], %8 {strides = array<i32>} : memref<8x1xf32, #tpu.memory_space<vmem>>, vector<8x1xf32>,
    return
  }
  func.func @transform_0(%arg0: i32) -> (i32, i32) {
    %c0_i32 = arith.constant 0 : i32
    %c0_i32_0 = arith.constant 0 : i32
    return %arg0, %c0_i32 : i32, i32
  }
  func.func @transform_1(%arg0: i32) -> (i32, i32) {
    %c0_i32 = arith.constant 0 : i32
    %c0_i32_0 = arith.constant 0 : i32
    %c0_i32_1 = arith.constant 0 : i32
    return %c0_i32, %c0_i32_0 : i32, i32
  }
  func.func @transform_2(%arg0: i32) -> (i32, i32) {
    %c0_i32 = arith.constant 0 : i32
    %c0_i32_0 = arith.constant 0 : i32
    %c0_i32_1 = arith.constant 0 : i32
    return %c0_i32, %c0_i32_0 : i32, i32
  }
  func.func @transform_3(%arg0: i32) -> (i32, i32) {
    %c0_i32 = arith.constant 0 : i32
    %c0_i32_0 = arith.constant 0 : i32
    return %arg0, %c0_i32 : i32, i32
  }
}

</mosaic_0001>

<bundles_post_ra>
// kernel: tpu_custom_call.1
= control target key start
LH: loop header
LB: loop body
LE: loop exit
PB: predicated region body
PF: predicated region fallthrough
CT: control target
= control target key end

     0   :  { %9 = vsyncpa [#allocation4], 0  ;;  %s79_s15 = smov [#allocation3]   ;;  %s112_s0 = inlined_call_operand.hbm [shape: f32[8,256], index: 0, kind: input, shape index: {}]   ;;  %s113_s1 = inlined_call_operand.vmem [shape: f32[1,256], index: 1, kind: input, shape index: {}]   ;;  %s114_s2 = inlined_call_operand.<no memory space> [shape: f32[1,1], index: 2, kind: input, shape index: {}]   ;;  %s115_s3 = inlined_call_operand.vmem [shape: f32[8,1], index: 3, kind: output, shape index: {}]  }
   0x1   :  { %s15_s14 = sshll.u32 %s112_s0, 4  ;;  %s17_s16 = sshll.u32 %s79_s15, 4  ;;  %s16_s14 = int_to_ptr.hbm [resolvable:$true] %s15_s14  ;;  %s18_s16 = int_to_ptr.vmem [resolvable:$true] %s17_s16 }
   0x2   :  { %20 = dma.hbm_to_vmem [thread:$0]  %s16_s14, 256, %s18_s16, [#allocation4]  }
   0x3   :  { %77 = dma.done.wait [#allocation4], 256  }
   0x4   :  { %78 = vsyncadd [#allocation4], 4294967040  ;;  %v29_v0 = vld [vmem:[#allocation3] sm:$0xff]  ;;  %v30_v1 = vld [vmem:[#allocation3 + $0x8] sm:$0xff]  ;;  %v43_v8 = vstv %s114_s2  ;;  %vm45_vm0 = vcmask 7168  }
   0x5   :  { %v31_v2 = vld [vmem:[%s113_s1] sm:$0x3] }
   0x6   :  { %v33_v3 = vperm.slane %v31_v2, 0  ;;  %v34_v4 = vperm.slane %v31_v2, 1 }
   0x8   :  { %v37_v5 = vmul.f32 %v33_v3, %v29_v0  ;;  %v38_v6 = vmul.f32 %v34_v4, %v30_v1 }
   0xa   :  { %v39_v7 = vadd.f32 %v38_v6, %v37_v5 }
   0xc   :  { %40 = vadd.xlane.f32.xlu0 %v39_v7 }
  0x7f   :  { %v41_v9 = vpop.xlane.xlu0 %40 }
  0x80   :  { %v44_v10 = vadd.f32 %v43_v8, %v41_v9 }
  0x82   :  { %46 = vst.msk [vmem:[%s115_s3] sm:$0xff] %vm45_vm0, %v44_v10 }
  0x83   :  { %51 = vsyncpa [#allocation4], 1 }

</bundles_post_ra>
